<compile_context>
chip_gen: v7x
topology: tpu7x:2x2x1
jax: 0.10.0
libtpu: 0.0.40
codegen_flags: <defaults>
</compile_context>

<pallas_src>
import math

import jax
import jax.numpy as jnp
from jax.experimental import pallas as pl
from jax.experimental.pallas import tpu as pltpu


H_POL = 64                 # policy hidden width
H_CRI = 32                 # critic hidden width
H_FUSED = H_POL + H_CRI    # 96 — fused hidden width
_TB_MAX = 256              # batch rows per grid block for large rollout batches


# ----------------------------- kernel ------------------------------------


def _fused_forward_kernel(
    obs_ref, eps_ref,
    w1_ref, b1_ref, w2_ref, b2_ref, w3_ref, logstd_ref,
    out_ref,
):
    A = eps_ref.shape[1]

    x = obs_ref[...]                                                       # (TB, D)

    # Fused layer 1: [policy.fc1 | critic.fc1]  -> (TB, 96)
    h1 = jnp.tanh(
        jnp.dot(x, w1_ref[...], preferred_element_type=jnp.float32) + b1_ref[...]
    )
    # Fused layer 2: block-diag(policy.fc2, critic.fc2) -> (TB, 96)
    h2 = jnp.tanh(
        jnp.dot(h1, w2_ref[...], preferred_element_type=jnp.float32) + b2_ref[...]
    )
    # Fused head: block-diag(policy.fc3, critic.fc3) -> (TB, A+1)
    head = jnp.dot(h2, w3_ref[...], preferred_element_type=jnp.float32)

    mu = head[:, :A]                                                       # (TB, A)
    value = head[:, A:A + 1]                                               # (TB, 1)

    logstd = logstd_ref[...]                                               # (1, A)
    std_row = jnp.exp(logstd)                                              # (1, A)

    # dist.sample() via reparameterization: action = mu + std * eps, eps ~ N(0,1)
    eps = eps_ref[...]
    action = mu + std_row * eps                                            # (TB, A)

    # Normal(mu, std).log_prob(action).sum(1); exact since action - mu == std*eps:
    #   -(action-mu)^2/(2*var) - logstd - 0.5*log(2*pi) == -0.5*eps^2 - logstd - 0.5*log(2*pi)
    logp = (
        jnp.sum(-0.5 * (eps * eps), axis=-1, keepdims=True)                # (TB, 1)
        - jnp.sum(logstd, axis=-1, keepdims=True)                          # (1, 1) broadcast
        - 0.5 * A * math.log(2.0 * math.pi)
    )

    # Packed lane-contiguous output slab: [action | mu | logp | value] -> (TB, 2A+2)
    out_ref[:, 0:A] = action
    out_ref[:, A:2 * A] = mu
    out_ref[:, 2 * A:2 * A + 1] = logp
    out_ref[:, 2 * A + 1:2 * A + 2] = value


# ----------------------------- wrappers ------------------------------------


def forward(obs, eps, fused):
    """Fused LinearACPolicy.forward + .critic (continuous_actions=True).

    Returns dict with 'action', 'mu', 'std' (Normal dist params), 'log_probs' (B,),
    and the critic 'value'.
    """
    B, D = obs.shape
    A = eps.shape[1]
    out_w = 2 * A + 2

    # Batch tiling: single block at small B, parallel grid over 256-row blocks otherwise.
    tb = B if B <= _TB_MAX else _TB_MAX
    n_blocks = pl.cdiv(B, tb)
    Bp = n_blocks * tb
    if Bp != B:
        pad = Bp - B
        obs_p = jnp.pad(obs, ((0, pad), (0, 0)))
        eps_p = jnp.pad(eps, ((0, pad), (0, 0)))
    else:
        obs_p, eps_p = obs, eps

    W1, B1 = fused["W1"], fused["B1"]
    W2, B2 = fused["W2"], fused["B2"]
    W3, logstd = fused["W3"], fused["logstd"]

    flops = 2 * Bp * (D * H_FUSED + H_FUSED * H_FUSED + H_FUSED * (A + 1))
    transcendentals = 2 * Bp * H_FUSED + A          # two tanh layers + exp(logstd) row
    bytes_accessed = 4 * (int(obs_p.size) + int(eps_p.size) + int(W1.size) + int(B1.size)
                          + int(W2.size) + int(B2.size) + int(W3.size) + int(logstd.size)
                          + Bp * out_w)

    batch_map = lambda i: (i, 0)
    bcast_map = lambda i: (0, 0)

    packed = pl.pallas_call(
        _fused_forward_kernel,
        out_shape=jax.ShapeDtypeStruct((Bp, out_w), jnp.float32),
        grid=(n_blocks,),
        in_specs=[
            pl.BlockSpec((tb, D), batch_map),          # obs
            pl.BlockSpec((tb, A), batch_map),          # eps
            pl.BlockSpec(W1.shape, bcast_map),         # fused W1 (D, 96)
            pl.BlockSpec(B1.shape, bcast_map),         # fused b1 (1, 96)
            pl.BlockSpec(W2.shape, bcast_map),         # block-diag W2 (96, 96)
            pl.BlockSpec(B2.shape, bcast_map),         # fused b2 (1, 96)
            pl.BlockSpec(W3.shape, bcast_map),         # block-diag W3 (96, A+1)
            pl.BlockSpec(logstd.shape, bcast_map),     # actor_logstd (1, A)
        ],
        out_specs=pl.BlockSpec((tb, out_w), batch_map),
        cost_estimate=pl.CostEstimate(
            flops=flops, transcendentals=transcendentals, bytes_accessed=bytes_accessed
        ),
        compiler_params=pltpu.CompilerParams(
            dimension_semantics=("parallel",)
        ),
    )(obs_p, eps_p, W1, B1, W2, B2, W3, logstd)

    packed = packed[:B]
    action = packed[:, 0:A]
    mu = packed[:, A:2 * A]
    log_probs = packed[:, 2 * A]
    value = packed[:, 2 * A + 1]
    std = jnp.broadcast_to(jnp.exp(logstd), mu.shape)   # no per-batch info; compute outside

    return {
        "action": action,
        "mu": mu,            # dist = Normal(mu, std)
        "std": std,
        "log_probs": log_probs,
        "value": jnp.squeeze(value),
    }


def critic(obs, fused):
    """LinearACPolicy.critic: critic_net(obs).squeeze() (reuses the fused kernel)."""
    B = obs.shape[0]
    A = fused["logstd"].shape[1]
    eps = jnp.zeros((B, A), jnp.float32)
    return forward(obs, eps, fused)["value"]


# ----------------------------- parameter init / packing ---------------------


def init_params(key, obs_dims, action_dims):
    """torch.nn.Linear-style init (U(-1/sqrt(in), 1/sqrt(in))), weights stored [in, out]."""
    def linear(k, fan_in, fan_out, bias=True):
        kw, kb = jax.random.split(k)
        bound = 1.0 / math.sqrt(fan_in)
        w = jax.random.uniform(kw, (fan_in, fan_out), jnp.float32, -bound, bound)
        if bias:
            b = jax.random.uniform(kb, (1, fan_out), jnp.float32, -bound, bound)
            return w, b
        return w, None

    ks = jax.random.split(key, 6)
    w1, b1 = linear(ks[0], obs_dims, H_POL)
    w2, b2 = linear(ks[1], H_POL, H_POL)
    w3, _ = linear(ks[2], H_POL, action_dims, bias=False)
    v1, c1 = linear(ks[3], obs_dims, H_CRI)
    v2, c2 = linear(ks[4], H_CRI, H_CRI)
    v3, _ = linear(ks[5], H_CRI, 1, bias=False)
    logstd = jnp.zeros((1, action_dims), jnp.float32)  # nn.Parameter(torch.zeros(1, A))
    return {
        "w1": w1, "b1": b1, "w2": w2, "b2": b2, "w3": w3, "logstd": logstd,
        "v1": v1, "c1": c1, "v2": v2, "c2": c2, "v3": v3,
    }


def pack_params(p):
    """Fuse policy + critic weights: concat layer 1, block-diagonal layers 2 and 3.

    Done once at setup (exact — zero off-diagonal blocks contribute nothing).
    """
    A = p["w3"].shape[1]
    W1 = jnp.concatenate([p["w1"], p["v1"]], axis=1)                 # (D, 96)
    B1 = jnp.concatenate([p["b1"], p["c1"]], axis=1)                 # (1, 96)
    W2 = jnp.zeros((H_FUSED, H_FUSED), jnp.float32)
    W2 = W2.at[:H_POL, :H_POL].set(p["w2"]).at[H_POL:, H_POL:].set(p["v2"])
    B2 = jnp.concatenate([p["b2"], p["c2"]], axis=1)                 # (1, 96)
    W3 = jnp.zeros((H_FUSED, A + 1), jnp.float32)
    W3 = W3.at[:H_POL, :A].set(p["w3"]).at[H_POL:, A:].set(p["v3"])  # (96, A+1)
    return {"W1": W1, "B1": B1, "W2": W2, "B2": B2, "W3": W3, "logstd": p["logstd"]}


# ----------------------------- reference (pure JAX, unfused) -----------------


def _reference(obs, eps, params):
    h1 = jnp.tanh(obs @ params["w1"] + params["b1"])
    h2 = jnp.tanh(h1 @ params["w2"] + params["b2"])
    mu = h2 @ params["w3"]
    std = jnp.exp(jnp.broadcast_to(params["logstd"], mu.shape))
    act = mu + std * eps
    lp = (-((act - mu) ** 2) / (2 * std ** 2)
          - jnp.log(std) - 0.5 * math.log(2 * math.pi)).sum(-1)
    c1h = jnp.tanh(obs @ params["v1"] + params["c1"])
    c2h = jnp.tanh(c1h @ params["v2"] + params["c2"])
    val = jnp.squeeze(c2h @ params["v3"])
    return mu, std, act, lp, val


# ----------------------------- main ------------------------------------


if __name__ == "__main__":
    OBS_DIMS, ACTION_DIMS = 16, 4

    key = jax.random.PRNGKey(0)
    k_params, k_obs, k_eps, k_obs2, k_eps2 = jax.random.split(key, 5)

    params = init_params(k_params, OBS_DIMS, ACTION_DIMS)
    fused = pack_params(params)

    # --- small batch (single grid point), same shape as the original demo ---
    B = 4
    obs = jax.random.normal(k_obs, (B, OBS_DIMS), jnp.float32)
    eps = jax.random.normal(k_eps, (B, ACTION_DIMS), jnp.float32)  # N(0,1) for dist.sample()

    out = forward(obs, eps, fused)
    jax.block_until_ready(out)

    mu_ref, std_ref, act_ref, lp_ref, val_ref = _reference(obs, eps, params)
    assert jnp.allclose(out["mu"], mu_ref, atol=1e-5)
    assert jnp.allclose(out["action"], act_ref, atol=1e-5)
    assert jnp.allclose(out["std"], std_ref, atol=1e-5)
    assert jnp.allclose(out["log_probs"], lp_ref, atol=1e-5)
    assert jnp.allclose(out["value"], val_ref, atol=1e-5)

    # --- larger batch exercising the batch-parallel grid + padding path ---
    B2 = 260   # 2 grid blocks of 256 rows (last one padded)
    obs2 = jax.random.normal(k_obs2, (B2, OBS_DIMS), jnp.float32)
    eps2 = jax.random.normal(k_eps2, (B2, ACTION_DIMS), jnp.float32)

    out2 = forward(obs2, eps2, fused)
    jax.block_until_ready(out2)

    mu_r2, std_r2, act_r2, lp_r2, val_r2 = _reference(obs2, eps2, params)
    assert out2["action"].shape == (B2, ACTION_DIMS)
    assert out2["value"].shape == (B2,)
    assert jnp.allclose(out2["mu"], mu_r2, atol=1e-4)
    assert jnp.allclose(out2["action"], act_r2, atol=1e-4)
    assert jnp.allclose(out2["log_probs"], lp_r2, atol=1e-4)
    assert jnp.allclose(out2["value"], val_r2, atol=1e-4)

    print("KERNEL_OK")
</pallas_src>

<mosaic_0001>
module attributes {stable_mosaic.version = 11 : i64} {
  func.func @_fused_forward_kernel(%arg0: i32, %arg1: memref<4x16xf32, #tpu.memory_space<vmem>>, %arg2: memref<4x4xf32, #tpu.memory_space<vmem>>, %arg3: memref<16x96xf32, #tpu.memory_space<vmem>>, %arg4: memref<1x96xf32, #tpu.memory_space<vmem>>, %arg5: memref<96x96xf32, #tpu.memory_space<vmem>>, %arg6: memref<1x96xf32, #tpu.memory_space<vmem>>, %arg7: memref<96x5xf32, #tpu.memory_space<vmem>>, %arg8: memref<1x4xf32, #tpu.memory_space<vmem>>, %arg9: memref<4x10xf32, #tpu.memory_space<vmem>>) attributes {dimension_semantics = [#tpu.dimension_semantics<parallel>], iteration_bounds = array<i64: 1>, scalar_prefetch = 0 : i64, scratch_operands = 0 : i64, tpu.core_type = #tpu.core_type<tc>, window_params = [{transform_indices = @transform_0, window_bounds = array<i64: 4, 16>}, {transform_indices = @transform_1, window_bounds = array<i64: 4, 4>}, {pipeline_mode = #tpu.pipeline_mode<synchronous>, transform_indices = @transform_2, window_bounds = array<i64: 16, 96>}, {pipeline_mode = #tpu.pipeline_mode<synchronous>, transform_indices = @transform_3, window_bounds = array<i64: 1, 96>}, {pipeline_mode = #tpu.pipeline_mode<synchronous>, transform_indices = @transform_4, window_bounds = array<i64: 96, 96>}, {pipeline_mode = #tpu.pipeline_mode<synchronous>, transform_indices = @transform_5, window_bounds = array<i64: 1, 96>}, {pipeline_mode = #tpu.pipeline_mode<synchronous>, transform_indices = @transform_6, window_bounds = array<i64: 96, 5>}, {pipeline_mode = #tpu.pipeline_mode<synchronous>, transform_indices = @transform_7, window_bounds = array<i64: 1, 4>}, {transform_indices = @transform_8, window_bounds = array<i64: 4, 10>}]} {
    %c0 = arith.constant 0 : index
    %c0_0 = arith.constant 0 : index
    %0 = vector.load %arg1[%c0, %c0_0] : memref<4x16xf32, #tpu.memory_space<vmem>>, vector<4x16xf32>
    %c0_1 = arith.constant 0 : index
    %c0_2 = arith.constant 0 : index
    %1 = vector.load %arg3[%c0_1, %c0_2] : memref<16x96xf32, #tpu.memory_space<vmem>>, vector<16x96xf32>
    %cst = arith.constant dense<0.000000e+00> : vector<4x96xf32>
    %2 = tpu.matmul %0, %1, %cst {dimension_numbers = #tpu.dot_dimension_numbers<[1], [0], [0], [1], [0, 0, 1, 1], [], []>} : vector<4x16xf32>, vector<16x96xf32>, vector<4x96xf32> -> vector<4x96xf32>
    %c0_3 = arith.constant 0 : index
    %c0_4 = arith.constant 0 : index
    %3 = vector.load %arg4[%c0_3, %c0_4] : memref<1x96xf32, #tpu.memory_space<vmem>>, vector<1x96xf32>
    %4 = vector.broadcast %3 : vector<1x96xf32> to vector<4x96xf32>
    %5 = arith.addf %2, %4 : vector<4x96xf32>
    %6 = math.tanh %5 : vector<4x96xf32>
    %c0_5 = arith.constant 0 : index
    %c0_6 = arith.constant 0 : index
    %7 = vector.load %arg5[%c0_5, %c0_6] : memref<96x96xf32, #tpu.memory_space<vmem>>, vector<96x96xf32>
    %cst_7 = arith.constant dense<0.000000e+00> : vector<4x96xf32>
    %8 = tpu.matmul %6, %7, %cst_7 {dimension_numbers = #tpu.dot_dimension_numbers<[1], [0], [0], [1], [0, 0, 1, 1], [], []>} : vector<4x96xf32>, vector<96x96xf32>, vector<4x96xf32> -> vector<4x96xf32>
    %c0_8 = arith.constant 0 : index
    %c0_9 = arith.constant 0 : index
    %9 = vector.load %arg6[%c0_8, %c0_9] : memref<1x96xf32, #tpu.memory_space<vmem>>, vector<1x96xf32>
    %10 = vector.broadcast %9 : vector<1x96xf32> to vector<4x96xf32>
    %11 = arith.addf %8, %10 : vector<4x96xf32>
    %12 = math.tanh %11 : vector<4x96xf32>
    %c0_10 = arith.constant 0 : index
    %c0_11 = arith.constant 0 : index
    %13 = vector.load %arg7[%c0_10, %c0_11] : memref<96x5xf32, #tpu.memory_space<vmem>>, vector<96x5xf32>
    %cst_12 = arith.constant dense<0.000000e+00> : vector<4x5xf32>
    %14 = tpu.matmul %12, %13, %cst_12 {dimension_numbers = #tpu.dot_dimension_numbers<[1], [0], [0], [1], [0, 0, 1, 1], [], []>} : vector<4x96xf32>, vector<96x5xf32>, vector<4x5xf32> -> vector<4x5xf32>
    %15 = vector.extract_strided_slice %14 {offsets = [0, 0], sizes = [4, 4], strides = [1, 1]} : vector<4x5xf32> to vector<4x4xf32>
    %16 = vector.extract_strided_slice %14 {offsets = [0, 4], sizes = [4, 1], strides = [1, 1]} : vector<4x5xf32> to vector<4x1xf32>
    %c0_13 = arith.constant 0 : index
    %c0_14 = arith.constant 0 : index
    %17 = vector.load %arg8[%c0_13, %c0_14] : memref<1x4xf32, #tpu.memory_space<vmem>>, vector<1x4xf32>
    %18 = math.exp %17 : vector<1x4xf32>
    %c0_15 = arith.constant 0 : index
    %c0_16 = arith.constant 0 : index
    %19 = vector.load %arg2[%c0_15, %c0_16] : memref<4x4xf32, #tpu.memory_space<vmem>>, vector<4x4xf32>
    %20 = vector.broadcast %18 : vector<1x4xf32> to vector<4x4xf32>
    %21 = arith.mulf %20, %19 : vector<4x4xf32>
    %22 = arith.addf %15, %21 : vector<4x4xf32>
    %23 = arith.mulf %19, %19 : vector<4x4xf32>
    %cst_17 = arith.constant -5.000000e-01 : f32
    %24 = vector.broadcast %cst_17 : f32 to vector<4x4xf32>
    %25 = arith.mulf %24, %23 : vector<4x4xf32>
    %cst_18 = arith.constant dense<0.000000e+00> : vector<4xf32>
    %26 = vector.multi_reduction <add>, %25, %cst_18 [1] : vector<4x4xf32> to vector<4xf32>
    %27 = vector.shape_cast %26 : vector<4xf32> to vector<4x1xf32>
    %cst_19 = arith.constant dense<0.000000e+00> : vector<1xf32>
    %28 = vector.multi_reduction <add>, %17, %cst_19 [1] : vector<1x4xf32> to vector<1xf32>
    %29 = vector.shape_cast %28 : vector<1xf32> to vector<1x1xf32>
    %30 = vector.broadcast %29 : vector<1x1xf32> to vector<4x1xf32>
    %31 = arith.subf %27, %30 : vector<4x1xf32>
    %cst_20 = arith.constant 3.67575407 : f32
    %32 = vector.broadcast %cst_20 : f32 to vector<4x1xf32>
    %33 = arith.subf %31, %32 : vector<4x1xf32>
    %c0_21 = arith.constant 0 : index
    %c0_22 = arith.constant 0 : index
    %34 = vector.load %arg9[%c0_21, %c0_22] : memref<4x10xf32, #tpu.memory_space<vmem>>, vector<4x4xf32>
    tpu.vector_store %arg9[%c0_21, %c0_22], %22 {strides = array<i32>} : memref<4x10xf32, #tpu.memory_space<vmem>>, vector<4x4xf32>,
    %c0_23 = arith.constant 0 : index
    %c4 = arith.constant 4 : index
    %35 = vector.load %arg9[%c0_23, %c4] : memref<4x10xf32, #tpu.memory_space<vmem>>, vector<4x4xf32>
    tpu.vector_store %arg9[%c0_23, %c4], %15 {strides = array<i32>} : memref<4x10xf32, #tpu.memory_space<vmem>>, vector<4x4xf32>,
    %c0_24 = arith.constant 0 : index
    %c8 = arith.constant 8 : index
    %36 = vector.load %arg9[%c0_24, %c8] : memref<4x10xf32, #tpu.memory_space<vmem>>, vector<4x1xf32>
    tpu.vector_store %arg9[%c0_24, %c8], %33 {strides = array<i32>} : memref<4x10xf32, #tpu.memory_space<vmem>>, vector<4x1xf32>,
    %c0_25 = arith.constant 0 : index
    %c9 = arith.constant 9 : index
    %37 = vector.load %arg9[%c0_25, %c9] : memref<4x10xf32, #tpu.memory_space<vmem>>, vector<4x1xf32>
    tpu.vector_store %arg9[%c0_25, %c9], %16 {strides = array<i32>} : memref<4x10xf32, #tpu.memory_space<vmem>>, vector<4x1xf32>,
    return
  }
  func.func @transform_0(%arg0: i32) -> (i32, i32) {
    %c0_i32 = arith.constant 0 : i32
    %c0_i32_0 = arith.constant 0 : i32
    return %arg0, %c0_i32 : i32, i32
  }
  func.func @transform_1(%arg0: i32) -> (i32, i32) {
    %c0_i32 = arith.constant 0 : i32
    %c0_i32_0 = arith.constant 0 : i32
    return %arg0, %c0_i32 : i32, i32
  }
  func.func @transform_2(%arg0: i32) -> (i32, i32) {
    %c0_i32 = arith.constant 0 : i32
    %c0_i32_0 = arith.constant 0 : i32
    %c0_i32_1 = arith.constant 0 : i32
    return %c0_i32, %c0_i32_0 : i32, i32
  }
  func.func @transform_3(%arg0: i32) -> (i32, i32) {
    %c0_i32 = arith.constant 0 : i32
    %c0_i32_0 = arith.constant 0 : i32
    %c0_i32_1 = arith.constant 0 : i32
    return %c0_i32, %c0_i32_0 : i32, i32
  }
  func.func @transform_4(%arg0: i32) -> (i32, i32) {
    %c0_i32 = arith.constant 0 : i32
    %c0_i32_0 = arith.constant 0 : i32
    %c0_i32_1 = arith.constant 0 : i32
    return %c0_i32, %c0_i32_0 : i32, i32
  }
  func.func @transform_5(%arg0: i32) -> (i32, i32) {
    %c0_i32 = arith.constant 0 : i32
    %c0_i32_0 = arith.constant 0 : i32
    %c0_i32_1 = arith.constant 0 : i32
    return %c0_i32, %c0_i32_0 : i32, i32
  }
  func.func @transform_6(%arg0: i32) -> (i32, i32) {
    %c0_i32 = arith.constant 0 : i32
    %c0_i32_0 = arith.constant 0 : i32
    %c0_i32_1 = arith.constant 0 : i32
    return %c0_i32, %c0_i32_0 : i32, i32
  }
  func.func @transform_7(%arg0: i32) -> (i32, i32) {
    %c0_i32 = arith.constant 0 : i32
    %c0_i32_0 = arith.constant 0 : i32
    %c0_i32_1 = arith.constant 0 : i32
    return %c0_i32, %c0_i32_0 : i32, i32
  }
  func.func @transform_8(%arg0: i32) -> (i32, i32) {
    %c0_i32 = arith.constant 0 : i32
    %c0_i32_0 = arith.constant 0 : i32
    return %arg0, %c0_i32 : i32, i32
  }
}

</mosaic_0001>

<bundles_post_ra>
// kernel: tpu_custom_call.1
= control target key start
LH: loop header
LB: loop body
LE: loop exit
PB: predicated region body
PF: predicated region fallthrough
CT: control target
= control target key end

     0   :  { %13 = vsyncpa [#allocation3], 0  ;;  %s793_s0 = inlined_call_operand.hbm [shape: f32[4,16], index: 0, kind: input, shape index: {}]   ;;  %s794_s1 = inlined_call_operand.hbm [shape: f32[4,4], index: 1, kind: input, shape index: {}]   ;;  %s795_s2 = inlined_call_operand.vmem [shape: f32[16,96], index: 2, kind: input, shape index: {}]   ;;  %s796_s3 = inlined_call_operand.vmem [shape: f32[1,96], index: 3, kind: input, shape index: {}]   ;;  %s797_s4 = inlined_call_operand.vmem [shape: f32[96,96], index: 4, kind: input, shape index: {}]   ;;  %s798_s5 = inlined_call_operand.vmem [shape: f32[1,96], index: 5, kind: input, shape index: {}]   ;;  %s799_s6 = inlined_call_operand.vmem [shape: f32[96,5], index: 6, kind: input, shape index: {}]   ;;  %s800_s7 = inlined_call_operand.vmem [shape: f32[1,4], index: 7, kind: input, shape index: {}]   ;;  %s801_s8 = inlined_call_operand.hbm [shape: f32[4,10], index: 8, kind: output, shape index: {}]  }
   0x1   :  { %14 = vsyncpa [#allocation6], 0 }
   0x2   :  { %15 = vsyncpa [#allocation4], 0  ;;  %s597_s27 = smov [#allocation2]   ;;  %s598_s29 = smov [#allocation5]  }
   0x3   :  { %s22_s28 = sshll.u32 %s597_s27, 4  ;;  %s32_s30 = sshll.u32 %s598_s29, 4  ;;  %s23_s28 = int_to_ptr.vmem [resolvable:$true] %s22_s28  ;;  %s33_s30 = int_to_ptr.vmem [resolvable:$true] %s32_s30 }
   0x4   :  { %s525_s11 = scalar_lea.hbm %s793_s0, 64 }
   0x5   :  { %p526_p0 = scmp.ne.s32.totalorder %s793_s0, %s525_s11  ;;  %p529_p1 = scmp.lt.u32.totalorder %s525_s11, %s793_s0 }
   0x7   :  { %p531_p2 = pnand %p529_p1, %p526_p0 }
   0x9   :  { %534 = shalt.err (!%p531_p2)
}
   0xa   :  { %s535_s16 = scalar_lea.vmem %s23_s28, 64  ;;  %p540_p4 = scmp.lt.s32.totalorder %s23_s28, %s23_s28 }
   0xb   :  { %p536_p3 = scmp.ne.s32.totalorder %s23_s28, %s535_s16  ;;  %p541_p5 = scmp.lt.s32.totalorder %s535_s16, %s535_s16 }
   0xd   :  { %p542_p6 = por %p541_p5, %p540_p4 }
   0xf   :  { %p543_p7 = pnand %p542_p6, %p536_p3 }
  0x11   :  { %546 = shalt.err (!%p543_p7)
}
  0x12   :  { %25 = dma.hbm_to_vmem [thread:$0]  %s793_s0, 64, %s23_s28, [#allocation3]  }
  0x13   :  { %s547_s21 = scalar_lea.hbm %s794_s1, 64 }
  0x14   :  { %p548_p8 = scmp.ne.s32.totalorder %s794_s1, %s547_s21  ;;  %p551_p9 = scmp.lt.u32.totalorder %s547_s21, %s794_s1 }
  0x16   :  { %p553_p10 = pnand %p551_p9, %p548_p8 }
  0x18   :  { %556 = shalt.err (!%p553_p10)
}
  0x19   :  { %s557_s26 = scalar_lea.vmem %s33_s30, 64  ;;  %p562_p12 = scmp.lt.s32.totalorder %s33_s30, %s33_s30 }
  0x1a   :  { %p558_p11 = scmp.ne.s32.totalorder %s33_s30, %s557_s26  ;;  %p563_p13 = scmp.lt.s32.totalorder %s557_s26, %s557_s26 }
  0x1c   :  { %p564_p0 = por %p563_p13, %p562_p12 }
  0x1e   :  { %p565_p1 = pnand %p564_p0, %p558_p11 }
  0x20   :  { %568 = shalt.err (!%p565_p1)
}
  0x21   :  { %35 = dma.hbm_to_vmem [thread:$0]  %s794_s1, 64, %s33_s30, [#allocation6]  }
  0x22   :  { %591 = dma.done.wait [#allocation3], 64  }
  0x23   :  { %592 = vsyncadd [#allocation3], 4294967232 }
  0x24   :  { %593 = dma.done.wait [#allocation6], 64  }
  0x25   :  { %594 = vsyncadd [#allocation6], 4294967232  ;;  %v599_v0 = vmov 0.0|0.0   ;;  %vm600_vm0 = vmmov 0   ;;  %v601_v1 = vmov 0.0   ;;  %v55_v2 = vld [vmem:[%s795_s2] sm:$0xff]  ;;  %v323_v59 = vlaneseq }
  0x26   :  { %472 = vmatprep.subr.bf16.mxu0 %v599_v0  ;;  %415 = vmatprep.mubr.msk.f32.mxu0 %vm600_vm0, %v601_v1  ;;  %v56_v3 = vld [vmem:[%s795_s2 + $0x8] sm:$0xff]  ;;  %v139_v5 = vld [vmem:[%s797_s4] sm:$0xff]  ;;  %v141_v7 = vld [vmem:[%s797_s4 + $0x10] sm:$0xff]  ;;  %vm64_vm1 = vcmask 130048   ;;  %vm158_vm2 = vcmask 785408   ;;  %vm336_vm3 = vcmask 24576  }
  0x27   :  { %475 = vmatprep.subr.bf16.mxu1 %v599_v0  ;;  %442 = vmatprep.mubr.msk.f32.mxu1 %vm600_vm0, %v601_v1  ;;  %v473_v4 = vpack.c.bf16 %v56_v3, %v55_v2  ;;  %v140_v6 = vld [vmem:[%s797_s4 + $0x8] sm:$0xff]  ;;  %v142_v9 = vld [vmem:[%s797_s4 + $0x18] sm:$0xff]  ;;  %v54_v10 = vld [vmem:[#allocation2] sm:$0xf]  ;;  %vm332_vm4 = vcmask 27648   ;;  %v324_v60 = vshrl.u32 %v323_v59, 7 }
  0x28   :  { %v476_v8 = vpack.c.bf16 %v140_v6, %v139_v5  ;;  %v479_v11 = vpack.c.bf16 %v142_v9, %v141_v7  ;;  %v143_v12 = vld [vmem:[%s797_s4 + $0x20] sm:$0xff]  ;;  %v144_v13 = vld [vmem:[%s797_s4 + $0x28] sm:$0xff]  ;;  %v145_v15 = vld [vmem:[%s797_s4 + $0x30] sm:$0xff]  ;;  %vm351_vm5 = vcmask 60448   ;;  %vm353_vm6 = vcmask 68672   ;;  %s604_s10 = smov [#allocation7]  }
  0x29   :  { %474 = vmatpush3.bf16.msra.mxu0 %v473_v4  ;;  %v482_v14 = vpack.c.bf16 %v144_v13, %v143_v12  ;;  %v146_v16 = vld [vmem:[%s797_s4 + $0x38] sm:$0xff]  ;;  %v147_v18 = vld [vmem:[%s797_s4 + $0x40] sm:$0xff]  ;;  %v148_v19 = vld [vmem:[%s797_s4 + $0x48] sm:$0xff]  ;;  %v325_v61 = vsub.s32 0, %v324_v60  ;;  %s366_s11 = sshll.u32 %s604_s10, 4  ;;  %vm358_vm7 = vcmask 76872   ;;  %s367_s11 = int_to_ptr.vmem [resolvable:$true] %s366_s11 }
  0x2a   :  { %477 = vmatpush3.bf16.msra.mxu1 %v476_v8  ;;  %493 = vmatprep.subr.bf16.mxu0 %v599_v0  ;;  %v485_v17 = vpack.c.bf16 %v146_v16, %v145_v15  ;;  %v488_v20 = vpack.c.bf16 %v148_v19, %v147_v18  ;;  %v149_v21 = vld [vmem:[%s797_s4 + $0x50] sm:$0xff]  ;;  %v150_v22 = vld [vmem:[%s797_s4 + $0x58] sm:$0xff]  ;;  %v233_v24 = vld [vmem:[%s799_s6] sm:$0xff]  ;;  %s569_s12 = scalar_lea.vmem %s367_s11, 64  ;;  %p574_p3 = scmp.lt.s32.totalorder %s367_s11, %s367_s11 }
  0x2b   :  { %478 = vmatprep.subr.bf16.mxu1 %v599_v0  ;;  %v491_v23 = vpack.c.bf16 %v150_v22, %v149_v21  ;;  %v234_v25 = vld [vmem:[%s799_s6 + $0x8] sm:$0xff]  ;;  %v235_v26 = vld [vmem:[%s799_s6 + $0x10] sm:$0xff]  ;;  %v236_v28 = vld [vmem:[%s799_s6 + $0x18] sm:$0xff]  ;;  %p570_p2 = scmp.ne.s32.totalorder %s367_s11, %s569_s12  ;;  %p575_p4 = scmp.lt.s32.totalorder %s569_s12, %s569_s12 }
  0x2c   :  { %416 = vmatmul.mubr.msk.f32.vlgmr.msra.gmra.mrb[0].mxu0 %vm64_vm1, %v54_v10  ;;  %v494_v27 = vpack.c.bf16 %v234_v25, %v233_v24  ;;  %v497_v29 = vpack.c.bf16 %v236_v28, %v235_v26  ;;  %v237_v30 = vld [vmem:[%s799_s6 + $0x20] sm:$0xff]  ;;  %v238_v31 = vld [vmem:[%s799_s6 + $0x28] sm:$0xff]  ;;  %v239_v38 = vld [vmem:[%s799_s6 + $0x30] sm:$0xff] }
  0x2d   :  { %469 = vmatprep.mubr.msk.f32.mxu0 %vm600_vm0, %v601_v1  ;;  %v500_v32 = vpack.c.bf16 %v238_v31, %v237_v30  ;;  %v376_v33 = vld [vmem:[%s796_s3] ss:$0 sm:$0xff]  ;;  %v240_v39 = vld [vmem:[%s799_s6 + $0x38] sm:$0xff]  ;;  %v242_v42 = vld [vmem:[%s799_s6 + $0x48] sm:$0xff]  ;;  %p576_p5 = por %p575_p4, %p574_p3 }
  0x2e   :  { %480 = vmatpush3.bf16.msra.mxu1 %v479_v11  ;;  %495 = vmatpush3.bf16.msra.mxu0 %v494_v27  ;;  %v503_v40 = vpack.c.bf16 %v240_v39, %v239_v38  ;;  %v241_v41 = vld [vmem:[%s799_s6 + $0x40] sm:$0xff]  ;;  %v243_v44 = vld [vmem:[%s799_s6 + $0x50] sm:$0xff]  ;;  %v244_v45 = vld [vmem:[%s799_s6 + $0x58] sm:$0xff] }
  0x2f   :  { %481 = vmatprep.subr.bf16.mxu1 %v599_v0  ;;  %496 = vmatprep.subr.bf16.mxu0 %v599_v0  ;;  %v506_v43 = vpack.c.bf16 %v242_v42, %v241_v41  ;;  %v509_v46 = vpack.c.bf16 %v244_v45, %v243_v44  ;;  %v318_v47 = vld [vmem:[%s800_s7] sm:$0x1]  ;;  %v321_v48 = vld [vmem:[#allocation5] sm:$0xf]  ;;  %s602_s7 = smov 4   ;;  %p577_p6 = pnand %p576_p5, %p570_p2 }
  0x30   :  { %v337_v49 = vsel %vm336_vm3, %v318_v47, 0.0  ;;  %v330_v50 = vmul.f32 %v321_v48, %v321_v48  ;;  %v378_v53 = vld [vmem:[%s798_s5] ss:$0 sm:$0xff]  ;;  %v319_v58 = vmul.f32 1.442695, %v318_v47  ;;  %s603_s5 = smov 5  }
  0x31   :  { %338 = vadd.xlane.f32.xlu0 %v337_v49 }
  0x32   :  { %483 = vmatpush3.bf16.msra.mxu1 %v482_v14  ;;  %498 = vmatpush3.bf16.msra.mxu0 %v497_v29  ;;  %v331_v51 = vmul.f32 -0.5, %v330_v50 }
  0x33   :  { %484 = vmatprep.subr.bf16.mxu1 %v599_v0  ;;  %499 = vmatprep.subr.bf16.mxu0 %v599_v0 }
  0x34   :  { %v333_v52 = vsel %vm332_vm4, %v331_v51, 0.0 }
  0x35   :  { %334 = vadd.xlane.f32.xlu0 %v333_v52 }
  0x36   :  { %486 = vmatpush3.bf16.msra.mxu1 %v485_v17  ;;  %501 = vmatpush3.bf16.msra.mxu0 %v500_v32 }
  0x37   :  { %487 = vmatprep.subr.bf16.mxu1 %v599_v0  ;;  %502 = vmatprep.subr.bf16.mxu0 %v599_v0 }
  0x3a   :  { %489 = vmatpush3.bf16.msra.mxu1 %v488_v20  ;;  %504 = vmatpush3.bf16.msra.mxu0 %v503_v40 }
  0x3b   :  { %490 = vmatprep.subr.bf16.mxu1 %v599_v0  ;;  %505 = vmatprep.subr.bf16.mxu0 %v599_v0 }
  0x3e   :  { %492 = vmatpush3.bf16.msra.mxu1 %v491_v23  ;;  %507 = vmatpush3.bf16.msra.mxu0 %v506_v43 }
  0x3f   :  { %508 = vmatprep.subr.bf16.mxu0 %v599_v0 }
  0x42   :  { %510 = vmatpush3.bf16.msra.mxu0 %v509_v46 }
  0xbe   :  { %v339_v4 = vpop.xlane.xlu0 %338 }
  0xbf   :  { %v343_v5 = vrot.slane %v339_v4, %v325_v61 }
  0xc2   :  { %v335_v6 = vpop.xlane.xlu0 %334 }
  0xc3   :  { %v344_v7 = vsub.f32 %v335_v6, %v343_v5 }
  0xc5   :  { %v381_v8 = vadd.f32 -3.675754, %v344_v7 }
  0xff   :  { %v134_v34 = vpop.f32.mrb[0].mxu0 }
 0x100   :  { %v135_v35 = vadd.f32 %v376_v33, %v134_v34  ;;  %v417_v36 = vpop.f32.mrb[1].mxu0 }
 0x102   :  { %519 = vtanh.f32 %v135_v35 }
 0x10c   :  { %v520_v37 = vpop.eup %519 }
 0x10d   :  { %443 = vmatmul.mubr.msk.f32.vlgmr.msra.gmra.mrb[0].mxu1 %vm158_vm2, %v520_v37 }
 0x1e0   :  { %v228_v54 = vpop.f32.mrb[0].mxu1 }
 0x1e1   :  { %v229_v55 = vadd.f32 %v378_v53, %v228_v54  ;;  %v444_v56 = vpop.f32.mrb[1].mxu1 }
 0x1e3   :  { %521 = vtanh.f32 %v229_v55 }
 0x1e4   :  { %523 = vpow2.f32 %v319_v58 }
 0x1ed   :  { %v522_v57 = vpop.eup %521 }
 0x1ee   :  { %470 = vmatmul.mubr.msk.f32.vlgmr.msra.gmra.mrb[2].mxu0 %vm158_vm2, %v522_v57  ;;  %v524_v62 = vpop.eup %523 }
 0x1ef   :  { %v326_v63 = vrot.slane %v524_v62, %v325_v61 }
 0x1f1   :  { %v328_v0 = vmul.f32 %v326_v63, %v321_v48 }
 0x2c1   :  { %v314_v1 = vpop.f32.mrb[2].mxu0 }
 0x2c2   :  { %348 = vrot.lane.b32.xlu1 %v314_v1, %s602_s7  ;;  %v471_v2 = vpop.f32.mrb[3].mxu0  ;;  %v329_v3 = vadd.f32 %v328_v0, %v314_v1 }
 0x2c4   :  { %346 = vst.msk [vmem:[#allocation7] sm:$0xf] %vm332_vm4, %v329_v3 }
 0x2c6   :  { %355 = vrot.lane.b32.xlu1 %v314_v1, %s603_s5 }
 0x334   :  { %v349_v9 = vpop.permute.xlu1 %348 }
 0x335   :  { %352 = vst.msk [vmem:[#allocation7] sm:$0xf] %vm351_vm5, %v349_v9 }
 0x336   :  { %354 = vst.msk [vmem:[#allocation7] sm:$0xf] %vm353_vm6, %v381_v8 }
 0x338   :  { %v356_v10 = vpop.permute.xlu1 %355 }
 0x339   :  { %359 = vst.msk [vmem:[#allocation7] sm:$0xf] %vm358_vm7, %v356_v10 }
 0x33a   :  { %580 = shalt.err (!%p577_p6)
}
 0x33b   :  { %s581_s4 = scalar_lea.hbm %s801_s8, 64 }
 0x33c   :  { %p582_p7 = scmp.ne.s32.totalorder %s801_s8, %s581_s4  ;;  %p585_p8 = scmp.lt.u32.totalorder %s581_s4, %s801_s8 }
 0x33e   :  { %p587_p9 = pnand %p585_p8, %p582_p7 }
 0x340   :  { %590 = shalt.err (!%p587_p9)
}
 0x341   :  { %369 = dma.vmem_to_hbm [thread:$0]  %s367_s11, 64, %s801_s8, [#allocation4]  }
 0x342   :  { %595 = dma.done.wait [#allocation4], 64  }
 0x343   :  { %596 = vsyncadd [#allocation4], 4294967232 }
 0x344   :  { %373 = vsyncpa [#allocation3], 1 }
 0x345   :  { %374 = vsyncpa [#allocation6], 1 }
 0x346   :  { %375 = vsyncpa [#allocation4], 1 }

</bundles_post_ra>
